<compile_context>
chip_gen: v7x
topology: tpu7x:2x2x1
jax: 0.10.0
libtpu: 0.0.40
codegen_flags: <defaults>
</compile_context>

<pallas_src>
import functools
import math

import jax
import jax.numpy as jnp
from jax import lax
from jax.experimental import pallas as pl
from jax.experimental.pallas import tpu as pltpu

_LANES = 128


def _flash_kernel(q_ref, k_ref, v_ref, o_ref, qs_sc, m_sc, l_sc, acc_sc, *,
                  scale_log2e):
    # q_ref: (hb, tq, D), k_ref/v_ref: (hb, tk, D), o_ref: (hb, tq, D)
    # qs_sc: (hb, tq, D) input dtype  -- Q pre-scaled by scale*log2(e)
    # m_sc/l_sc: (hb, tq, 128) f32 lane-replicated, acc_sc: (hb, tq, D) f32
    kv = pl.program_id(2)

    @pl.when(kv == 0)
    def _init():
        # Q block is resident across the kv axis: scale it once, reuse from VMEM.
        qs_sc[...] = (q_ref[...].astype(jnp.float32) * scale_log2e).astype(qs_sc.dtype)
        m_sc[...] = jnp.full(m_sc.shape, -jnp.inf, dtype=m_sc.dtype)
        l_sc[...] = jnp.zeros(l_sc.shape, l_sc.dtype)
        acc_sc[...] = jnp.zeros(acc_sc.shape, acc_sc.dtype)

    q = qs_sc[...]                  # (hb, tq, D), native dtype, pre-scaled
    k = k_ref[...]                  # (hb, tk, D)
    v = v_ref[...]                  # (hb, tk, D)

    # Batched Q @ K^T: contract over D (last dim of both), batch over heads.
    # Result is already in log2 units because scale*log2(e) is folded into Q.
    s = lax.dot_general(
        q, k,
        dimension_numbers=(((2,), (2,)), ((0,), (0,))),
        preferred_element_type=jnp.float32,
    )                               # (hb, tq, tk) f32

    # Online softmax update in base 2 (base cancels in the normalization).
    m_prev = m_sc[...]                                    # (hb, tq, 128)
    m_cur = jnp.max(s, axis=-1, keepdims=True)            # (hb, tq, 1)
    m_new = jnp.maximum(m_prev, m_cur)                    # lane-replicated
    alpha = jnp.exp2(m_prev - m_new)                      # (hb, tq, 128)
    p = jnp.exp2(s - m_new[..., :1])                      # (hb, tq, tk)

    l_sc[...] = alpha * l_sc[...] + jnp.sum(p, axis=-1, keepdims=True)
    acc_sc[...] = alpha[..., :1] * acc_sc[...] + lax.dot_general(
        p.astype(v.dtype), v,
        dimension_numbers=(((2,), (1,)), ((0,), (0,))),
        preferred_element_type=jnp.float32,
    )
    m_sc[...] = m_new

    @pl.when(kv == pl.num_programs(2) - 1)
    def _finalize():
        l = l_sc[..., :1]                                 # (hb, tq, 1)
        if o_ref.dtype == jnp.float32:
            inv_l = 1.0 / l                               # exact for f32 parity
        else:
            inv_l = pl.reciprocal(l, approx=True)         # EUP path, ~free
        o_ref[...] = (acc_sc[...] * inv_l).astype(o_ref.dtype)


def _sublane_multiple(dtype):
    nbytes = jnp.dtype(dtype).itemsize
    return max(8, 32 // nbytes)        # f32 -> 8, bf16 -> 16, int8/fp8 -> 32


def _choose_tile(total, target, mult):
    """Largest divisor of `total` <= target that is a multiple of `mult`
    (falls back to a multiple of 8, then to the full extent)."""
    if total <= target:
        return total
    for m in (mult, 8):
        for t in range(min(target, total), m - 1, -1):
            if total % t == 0 and t % m == 0:
                return t
    # TODO(synk): masked tail tiles for awkward sequence lengths instead of
    # falling back to the full extent.
    return total


def _vmem_capacity_bytes():
    """Per-core VMEM capacity; conservative 64 MiB fallback if unknown."""
    try:
        info = pltpu.get_tpu_info()
        for attr in ("vmem_capacity_bytes", "vmem_size_bytes", "vmem_bytes"):
            cap = getattr(info, attr, None)
            if cap:
                return int(cap)
    except Exception:
        pass
    try:
        kind = jax.devices()[0].device_kind.lower()
        if "v7" in kind:
            return 64 << 20
        if any(t in kind for t in ("v4", "v5", "v6")):
            return 128 << 20
    except Exception:
        pass
    return 64 << 20


def scaled_dot_attn(query, key, value, *, q_tile=None, kv_tile=None):
    """Pallas equivalent of F.scaled_dot_product_attention(q, k, v) (no mask)."""
    B, H, Sq, D = query.shape
    _, _, Sk, _ = key.shape
    assert key.shape == (B, H, Sk, D) and value.shape == (B, H, Sk, D)

    bh = B * H
    q = query.reshape(bh, Sq, D)
    k = key.reshape(bh, Sk, D)
    v = value.reshape(bh, Sk, D)

    itemsize = jnp.dtype(query.dtype).itemsize
    sub_m = _sublane_multiple(query.dtype)

    # Generation-aware sizing: big-VMEM parts (v5e/v6e, 128 MiB) get larger
    # tiles and a higher clamp; 64 MiB parts (v7x) stay conservative.
    cap = _vmem_capacity_bytes()
    big_vmem = cap >= (100 << 20)
    if q_tile is None:
        q_tile = 512 if big_vmem else 256
    if kv_tile is None:
        kv_tile = 1024 if big_vmem else 512
    vmem_clamp = max(min(cap - (8 << 20), 100 << 20), 32 << 20)

    tq = _choose_tile(Sq, q_tile, sub_m)
    tk = _choose_tile(Sk, kv_tile, sub_m)
    num_q_tiles = Sq // tq

    # Batch several heads per grid step when per-head tiles are small, but
    # keep the parallel grid extent >= 2 so both v7x TensorCores stay fed.
    hb = 1
    if tq * D <= 128 * 128:
        for cand in (8, 4, 2, 1):
            if bh % cand != 0:
                continue
            if cand == 1 or (bh // cand) * num_q_tiles >= 2:
                hb = cand
                break

    # VMEM budget including double-buffering, f32 score/prob temporaries and
    # 128-lane / sublane padding; shrink hb/tk/tq if it overflows the clamp.
    def _pad_bytes(sub, lane, nbytes):
        sm = max(8, 32 // nbytes)
        sub_p = -(-sub // sm) * sm
        lane_p = -(-lane // _LANES) * _LANES
        return sub_p * lane_p * nbytes

    def _budget(hb_, tq_, tk_):
        b = 0
        b += 2 * hb_ * _pad_bytes(tq_, D, itemsize)        # Q blocks (x2 buf)
        b += 4 * hb_ * _pad_bytes(tk_, D, itemsize)        # K + V blocks (x2 buf)
        b += 2 * hb_ * _pad_bytes(tq_, D, itemsize)        # O blocks (x2 buf)
        b += hb_ * _pad_bytes(tq_, D, itemsize)            # pre-scaled Q scratch
        b += 2 * hb_ * _pad_bytes(tq_, _LANES, 4)          # m, l scratch
        b += hb_ * _pad_bytes(tq_, D, 4)                   # acc scratch
        b += 2 * hb_ * _pad_bytes(tq_, tk_, 4)             # s / p temporaries
        return b

    for _ in range(16):
        if _budget(hb, tq, tk) <= vmem_clamp:
            break
        if hb > 1:
            hb //= 2
            continue
        ntk = _choose_tile(Sk, max(tk // 2, sub_m), sub_m)
        if ntk < tk:
            tk = ntk
            continue
        ntq = _choose_tile(Sq, max(tq // 2, sub_m), sub_m)
        if ntq < tq:
            tq = ntq
            num_q_tiles = Sq // tq
            continue
        break

    vmem_limit = int(min(max(int(_budget(hb, tq, tk) * 1.25), 32 << 20), vmem_clamp))

    # Fold 1/sqrt(D) * log2(e) into Q so the kernel can use exp2 directly.
    scale_log2e = math.log2(math.e) / math.sqrt(D)
    grid = (bh // hb, Sq // tq, Sk // tk)

    kernel = functools.partial(_flash_kernel, scale_log2e=scale_log2e)

    out = pl.pallas_call(
        kernel,
        out_shape=jax.ShapeDtypeStruct((bh, Sq, D), query.dtype),
        grid_spec=pltpu.PrefetchScalarGridSpec(
            num_scalar_prefetch=0,
            grid=grid,
            in_specs=[
                pl.BlockSpec((hb, tq, D), lambda b, i, j: (b, i, 0)),
                pl.BlockSpec((hb, tk, D), lambda b, i, j: (b, j, 0)),
                pl.BlockSpec((hb, tk, D), lambda b, i, j: (b, j, 0)),
            ],
            out_specs=pl.BlockSpec((hb, tq, D), lambda b, i, j: (b, i, 0)),
            scratch_shapes=[
                pltpu.VMEM((hb, tq, D), query.dtype),       # pre-scaled Q
                pltpu.VMEM((hb, tq, _LANES), jnp.float32),  # running max m
                pltpu.VMEM((hb, tq, _LANES), jnp.float32),  # running denom l
                pltpu.VMEM((hb, tq, D), jnp.float32),       # output accumulator
            ],
        ),
        compiler_params=pltpu.CompilerParams(
            dimension_semantics=("parallel", "parallel", "arbitrary"),
            vmem_limit_bytes=vmem_limit,
        ),
    )(q, k, v)

    return out.reshape(B, H, Sq, D)


def _reference_sdpa(query, key, value):
    # Pure-JAX reference for correctness checking.
    D = query.shape[-1]
    s = jnp.einsum("bhqd,bhkd->bhqk", query.astype(jnp.float32),
                   key.astype(jnp.float32)) / math.sqrt(D)
    p = jax.nn.softmax(s, axis=-1)
    return jnp.einsum("bhqk,bhkd->bhqd", p,
                      value.astype(jnp.float32)).astype(query.dtype)


if __name__ == "__main__":
    # Case 1: small shapes consistent with the module's forward (B, H, S, D).
    B, H, Sq, Sk, D = 2, 4, 8, 8, 32
    kq, kk, kv_ = jax.random.split(jax.random.PRNGKey(0), 3)
    query = jax.random.normal(kq, (B, H, Sq, D), dtype=jnp.float32)
    key_ = jax.random.normal(kk, (B, H, Sk, D), dtype=jnp.float32)
    value = jax.random.normal(kv_, (B, H, Sk, D), dtype=jnp.float32)

    out = jax.block_until_ready(scaled_dot_attn(query, key_, value))
    ref = _reference_sdpa(query, key_, value)
    assert out.shape == (B, H, Sq, D)
    assert jnp.allclose(out, ref, atol=1e-2, rtol=1e-2), "mismatch vs reference (case 1)"

    # Case 2: exercises the flash path (multiple q-tiles x kv-tiles).
    B2, H2, Sq2, Sk2, D2 = 1, 2, 512, 1024, 64
    kq2, kk2, kv2 = jax.random.split(jax.random.PRNGKey(1), 3)
    q2 = jax.random.normal(kq2, (B2, H2, Sq2, D2), dtype=jnp.float32)
    k2 = jax.random.normal(kk2, (B2, H2, Sk2, D2), dtype=jnp.float32)
    v2 = jax.random.normal(kv2, (B2, H2, Sk2, D2), dtype=jnp.float32)

    out2 = jax.block_until_ready(scaled_dot_attn(q2, k2, v2))
    ref2 = _reference_sdpa(q2, k2, v2)
    assert jnp.allclose(out2, ref2, atol=1e-2, rtol=1e-2), "mismatch vs reference (case 2)"

    print("KERNEL_OK")
</pallas_src>

<mosaic_0001>
module attributes {stable_mosaic.version = 11 : i64} {
  func.func @_flash_kernel(%arg0: i32, %arg1: i32, %arg2: i32, %arg3: memref<4x8x32xf32, #tpu.memory_space<vmem>>, %arg4: memref<4x8x32xf32, #tpu.memory_space<vmem>>, %arg5: memref<4x8x32xf32, #tpu.memory_space<vmem>>, %arg6: memref<4x8x32xf32, #tpu.memory_space<vmem>>, %arg7: memref<4x8x32xf32, #tpu.memory_space<vmem>>, %arg8: memref<4x8x128xf32, #tpu.memory_space<vmem>>, %arg9: memref<4x8x128xf32, #tpu.memory_space<vmem>>, %arg10: memref<4x8x32xf32, #tpu.memory_space<vmem>>) attributes {dimension_semantics = [#tpu.dimension_semantics<parallel>, #tpu.dimension_semantics<parallel>, #tpu.dimension_semantics<arbitrary>], iteration_bounds = array<i64: 2, 1, 1>, scalar_prefetch = 0 : i64, scratch_operands = 4 : i64, tpu.core_type = #tpu.core_type<tc>, window_params = [{transform_indices = @transform_0, window_bounds = array<i64: 4, 8, 32>}, {transform_indices = @transform_1, window_bounds = array<i64: 4, 8, 32>}, {transform_indices = @transform_2, window_bounds = array<i64: 4, 8, 32>}, {transform_indices = @transform_3, window_bounds = array<i64: 4, 8, 32>}]} {
    %c0_i32 = arith.constant 0 : i32
    %0 = arith.cmpi eq, %arg2, %c0_i32 : i32
    %1 = arith.extui %0 : i1 to i32
    %c0_i32_0 = arith.constant 0 : i32
    %2 = arith.cmpi ne, %1, %c0_i32_0 : i32
    scf.if %2 {
      %c0_32 = arith.constant 0 : index
      %c0_33 = arith.constant 0 : index
      %c0_34 = arith.constant 0 : index
      %36 = vector.load %arg3[%c0_32, %c0_33, %c0_34] : memref<4x8x32xf32, #tpu.memory_space<vmem>>, vector<4x8x32xf32>
      %cst_35 = arith.constant 0.255034864 : f32
      %37 = vector.broadcast %cst_35 : f32 to vector<4x8x32xf32>
      %38 = arith.mulf %36, %37 : vector<4x8x32xf32>
      %c0_36 = arith.constant 0 : index
      %c0_37 = arith.constant 0 : index
      %c0_38 = arith.constant 0 : index
      %39 = vector.load %arg7[%c0_36, %c0_37, %c0_38] : memref<4x8x32xf32, #tpu.memory_space<vmem>>, vector<4x8x32xf32>
      tpu.vector_store %arg7[%c0_36, %c0_37, %c0_38], %38 {strides = array<i32>} : memref<4x8x32xf32, #tpu.memory_space<vmem>>, vector<4x8x32xf32>,
      %cst_39 = arith.constant 0xFF800000 : f32
      %40 = vector.broadcast %cst_39 : f32 to vector<4x8x128xf32>
      %c0_40 = arith.constant 0 : index
      %c0_41 = arith.constant 0 : index
      %c0_42 = arith.constant 0 : index
      %41 = vector.load %arg8[%c0_40, %c0_41, %c0_42] : memref<4x8x128xf32, #tpu.memory_space<vmem>>, vector<4x8x128xf32>
      tpu.vector_store %arg8[%c0_40, %c0_41, %c0_42], %40 {strides = array<i32>} : memref<4x8x128xf32, #tpu.memory_space<vmem>>, vector<4x8x128xf32>,
      %cst_43 = arith.constant 0.000000e+00 : f32
      %42 = vector.broadcast %cst_43 : f32 to vector<4x8x128xf32>
      %c0_44 = arith.constant 0 : index
      %c0_45 = arith.constant 0 : index
      %c0_46 = arith.constant 0 : index
      %43 = vector.load %arg9[%c0_44, %c0_45, %c0_46] : memref<4x8x128xf32, #tpu.memory_space<vmem>>, vector<4x8x128xf32>
      tpu.vector_store %arg9[%c0_44, %c0_45, %c0_46], %42 {strides = array<i32>} : memref<4x8x128xf32, #tpu.memory_space<vmem>>, vector<4x8x128xf32>,
      %cst_47 = arith.constant 0.000000e+00 : f32
      %44 = vector.broadcast %cst_47 : f32 to vector<4x8x32xf32>
      %c0_48 = arith.constant 0 : index
      %c0_49 = arith.constant 0 : index
      %c0_50 = arith.constant 0 : index
      %45 = vector.load %arg10[%c0_48, %c0_49, %c0_50] : memref<4x8x32xf32, #tpu.memory_space<vmem>>, vector<4x8x32xf32>
      tpu.vector_store %arg10[%c0_48, %c0_49, %c0_50], %44 {strides = array<i32>} : memref<4x8x32xf32, #tpu.memory_space<vmem>>, vector<4x8x32xf32>,
    } else {
    }
    %c0 = arith.constant 0 : index
    %c0_1 = arith.constant 0 : index
    %c0_2 = arith.constant 0 : index
    %3 = vector.load %arg7[%c0, %c0_1, %c0_2] : memref<4x8x32xf32, #tpu.memory_space<vmem>>, vector<4x8x32xf32>
    %c0_3 = arith.constant 0 : index
    %c0_4 = arith.constant 0 : index
    %c0_5 = arith.constant 0 : index
    %4 = vector.load %arg4[%c0_3, %c0_4, %c0_5] : memref<4x8x32xf32, #tpu.memory_space<vmem>>, vector<4x8x32xf32>
    %c0_6 = arith.constant 0 : index
    %c0_7 = arith.constant 0 : index
    %c0_8 = arith.constant 0 : index
    %5 = vector.load %arg5[%c0_6, %c0_7, %c0_8] : memref<4x8x32xf32, #tpu.memory_space<vmem>>, vector<4x8x32xf32>
    %cst = arith.constant dense<0.000000e+00> : vector<4x8x8xf32>
    %6 = tpu.matmul %3, %4, %cst {dimension_numbers = #tpu.dot_dimension_numbers<[2], [2], [1], [1], [0, 0, 0, 1, 1, 1], [0], [0]>} : vector<4x8x32xf32>, vector<4x8x32xf32>, vector<4x8x8xf32> -> vector<4x8x8xf32>
    %c0_9 = arith.constant 0 : index
    %c0_10 = arith.constant 0 : index
    %c0_11 = arith.constant 0 : index
    %7 = vector.load %arg8[%c0_9, %c0_10, %c0_11] : memref<4x8x128xf32, #tpu.memory_space<vmem>>, vector<4x8x128xf32>
    %cst_12 = arith.constant dense<0xFF800000> : vector<4x8xf32>
    %8 = vector.multi_reduction <maximumf>, %6, %cst_12 [2] : vector<4x8x8xf32> to vector<4x8xf32>
    %9 = vector.shape_cast %8 : vector<4x8xf32> to vector<4x8x1xf32>
    %10 = vector.broadcast %9 : vector<4x8x1xf32> to vector<4x8x128xf32>
    %11 = arith.maximumf %7, %10 : vector<4x8x128xf32>
    %12 = arith.subf %7, %11 : vector<4x8x128xf32>
    %13 = math.exp2 %12 : vector<4x8x128xf32>
    %14 = vector.extract_strided_slice %11 {offsets = [0, 0, 0], sizes = [4, 8, 1], strides = [1, 1, 1]} : vector<4x8x128xf32> to vector<4x8x1xf32>
    %15 = vector.broadcast %14 : vector<4x8x1xf32> to vector<4x8x8xf32>
    %16 = arith.subf %6, %15 : vector<4x8x8xf32>
    %17 = math.exp2 %16 : vector<4x8x8xf32>
    %c0_13 = arith.constant 0 : index
    %c0_14 = arith.constant 0 : index
    %c0_15 = arith.constant 0 : index
    %18 = vector.load %arg9[%c0_13, %c0_14, %c0_15] : memref<4x8x128xf32, #tpu.memory_space<vmem>>, vector<4x8x128xf32>
    %19 = arith.mulf %13, %18 : vector<4x8x128xf32>
    %cst_16 = arith.constant dense<0.000000e+00> : vector<4x8xf32>
    %20 = vector.multi_reduction <add>, %17, %cst_16 [2] : vector<4x8x8xf32> to vector<4x8xf32>
    %21 = vector.shape_cast %20 : vector<4x8xf32> to vector<4x8x1xf32>
    %22 = vector.broadcast %21 : vector<4x8x1xf32> to vector<4x8x128xf32>
    %23 = arith.addf %19, %22 : vector<4x8x128xf32>
    %c0_17 = arith.constant 0 : index
    %c0_18 = arith.constant 0 : index
    %c0_19 = arith.constant 0 : index
    %24 = vector.load %arg9[%c0_17, %c0_18, %c0_19] : memref<4x8x128xf32, #tpu.memory_space<vmem>>, vector<4x8x128xf32>
    tpu.vector_store %arg9[%c0_17, %c0_18, %c0_19], %23 {strides = array<i32>} : memref<4x8x128xf32, #tpu.memory_space<vmem>>, vector<4x8x128xf32>,
    %25 = vector.extract_strided_slice %13 {offsets = [0, 0, 0], sizes = [4, 8, 1], strides = [1, 1, 1]} : vector<4x8x128xf32> to vector<4x8x1xf32>
    %c0_20 = arith.constant 0 : index
    %c0_21 = arith.constant 0 : index
    %c0_22 = arith.constant 0 : index
    %26 = vector.load %arg10[%c0_20, %c0_21, %c0_22] : memref<4x8x32xf32, #tpu.memory_space<vmem>>, vector<4x8x32xf32>
    %27 = vector.broadcast %25 : vector<4x8x1xf32> to vector<4x8x32xf32>
    %28 = arith.mulf %27, %26 : vector<4x8x32xf32>
    %cst_23 = arith.constant dense<0.000000e+00> : vector<4x8x32xf32>
    %29 = tpu.matmul %17, %5, %cst_23 {dimension_numbers = #tpu.dot_dimension_numbers<[2], [1], [1], [2], [0, 0, 0, 1, 1, 2], [0], [0]>} : vector<4x8x8xf32>, vector<4x8x32xf32>, vector<4x8x32xf32> -> vector<4x8x32xf32>
    %30 = arith.addf %28, %29 : vector<4x8x32xf32>
    %c0_24 = arith.constant 0 : index
    %c0_25 = arith.constant 0 : index
    %c0_26 = arith.constant 0 : index
    %31 = vector.load %arg10[%c0_24, %c0_25, %c0_26] : memref<4x8x32xf32, #tpu.memory_space<vmem>>, vector<4x8x32xf32>
    tpu.vector_store %arg10[%c0_24, %c0_25, %c0_26], %30 {strides = array<i32>} : memref<4x8x32xf32, #tpu.memory_space<vmem>>, vector<4x8x32xf32>,
    %c0_27 = arith.constant 0 : index
    %c0_28 = arith.constant 0 : index
    %c0_29 = arith.constant 0 : index
    %32 = vector.load %arg8[%c0_27, %c0_28, %c0_29] : memref<4x8x128xf32, #tpu.memory_space<vmem>>, vector<4x8x128xf32>
    tpu.vector_store %arg8[%c0_27, %c0_28, %c0_29], %11 {strides = array<i32>} : memref<4x8x128xf32, #tpu.memory_space<vmem>>, vector<4x8x128xf32>,
    %c0_i32_30 = arith.constant 0 : i32
    %33 = arith.cmpi eq, %arg2, %c0_i32_30 : i32
    %34 = arith.extui %33 : i1 to i32
    %c0_i32_31 = arith.constant 0 : i32
    %35 = arith.cmpi ne, %34, %c0_i32_31 : i32
    scf.if %35 {
      %c0_32 = arith.constant 0 : index
      %c0_33 = arith.constant 0 : index
      %c0_34 = arith.constant 0 : index
      %36 = vector.load %arg9[%c0_32, %c0_33, %c0_34] : memref<4x8x128xf32, #tpu.memory_space<vmem>>, vector<4x8x1xf32>
      %cst_35 = arith.constant 1.000000e+00 : f32
      %37 = vector.broadcast %cst_35 : f32 to vector<4x8x1xf32>
      %38 = arith.divf %37, %36 : vector<4x8x1xf32>
      %c0_36 = arith.constant 0 : index
      %c0_37 = arith.constant 0 : index
      %c0_38 = arith.constant 0 : index
      %39 = vector.load %arg10[%c0_36, %c0_37, %c0_38] : memref<4x8x32xf32, #tpu.memory_space<vmem>>, vector<4x8x32xf32>
      %40 = vector.broadcast %38 : vector<4x8x1xf32> to vector<4x8x32xf32>
      %41 = arith.mulf %39, %40 : vector<4x8x32xf32>
      %c0_39 = arith.constant 0 : index
      %c0_40 = arith.constant 0 : index
      %c0_41 = arith.constant 0 : index
      %42 = vector.load %arg6[%c0_39, %c0_40, %c0_41] : memref<4x8x32xf32, #tpu.memory_space<vmem>>, vector<4x8x32xf32>
      tpu.vector_store %arg6[%c0_39, %c0_40, %c0_41], %41 {strides = array<i32>} : memref<4x8x32xf32, #tpu.memory_space<vmem>>, vector<4x8x32xf32>,
    } else {
    }
    return
  }
  func.func @transform_0(%arg0: i32, %arg1: i32, %arg2: i32) -> (i32, i32, i32) {
    %c0_i32 = arith.constant 0 : i32
    %c0_i32_0 = arith.constant 0 : i32
    return %arg0, %arg1, %c0_i32 : i32, i32, i32
  }
  func.func @transform_1(%arg0: i32, %arg1: i32, %arg2: i32) -> (i32, i32, i32) {
    %c0_i32 = arith.constant 0 : i32
    %c0_i32_0 = arith.constant 0 : i32
    return %arg0, %arg2, %c0_i32 : i32, i32, i32
  }
  func.func @transform_2(%arg0: i32, %arg1: i32, %arg2: i32) -> (i32, i32, i32) {
    %c0_i32 = arith.constant 0 : i32
    %c0_i32_0 = arith.constant 0 : i32
    return %arg0, %arg2, %c0_i32 : i32, i32, i32
  }
  func.func @transform_3(%arg0: i32, %arg1: i32, %arg2: i32) -> (i32, i32, i32) {
    %c0_i32 = arith.constant 0 : i32
    %c0_i32_0 = arith.constant 0 : i32
    return %arg0, %arg1, %c0_i32 : i32, i32, i32
  }
}

</mosaic_0001>

<bundles_post_ra>
// kernel: tpu_custom_call.1
= control target key start
LH: loop header
LB: loop body
LE: loop exit
PB: predicated region body
PF: predicated region fallthrough
CT: control target
= control target key end

     0   :  { %s2029_s0 = inlined_call_operand.hbm [shape: f32[8,8,32], index: 0, kind: input, shape index: {}]   ;;  %s2030_s1 = inlined_call_operand.hbm [shape: f32[8,8,32], index: 1, kind: input, shape index: {}]   ;;  %s2031_s2 = inlined_call_operand.hbm [shape: f32[8,8,32], index: 2, kind: input, shape index: {}]   ;;  %s2032_s3 = inlined_call_operand.hbm [shape: f32[8,8,32], index: 3, kind: output, shape index: {}]  }
   0x1   :  { %2042 = sst [smem:[#allocation19_spill]] %s2030_s1 }
   0x2   :  { %8 = vsyncpa [#allocation7], 0 }
   0x3   :  { %10 = vsyncpa [#allocation7 + $0x1], 0 }
   0x4   :  { %11 = vsyncpa [#allocation10], 0 }
   0x5   :  { %13 = vsyncpa [#allocation10 + $0x1], 0 }
   0x6   :  { %14 = vsyncpa [#allocation8], 0 }
   0x7   :  { %16 = vsyncpa [#allocation8 + $0x1], 0  ;;  %s1669_s12 = smov 0   ;;  %s1671_s13 = smov 0  }
   0x8   :  { %s1673_s14 = smov 0   ;;  %s1675_s15 = smov 0  }
   0x9   :  { %s1677_s16 = smov 0   ;;  %s1679_s17 = smov 0  }
   0xa LB: > { %2043 = sst [smem:[#allocation16_spill]] %s1632_s16  ;;  %s1700_s18 = sadd.s32 4294967295, %s1636_s17   ;;  %s1636_s17 = sphi %s1679_s17, %s22_s17   ;;  %s1632_s16 = sphi %s1677_s16, %s2066_s16   ;;  %s1628_s15 = sphi %s1675_s15, %s2065_s15   ;;  %s1624_s14 = sphi %s1673_s14, %s2069_s14   ;;  %s1620_s13 = sphi %s1671_s13, %s2068_s13   ;;  %s1616_s12 = sphi %s1669_s12, %s2067_s12  }
   0xb   : > { %s1261_s19 = sadd.s32 4294967294, %s1636_s17   ;;  %s41_s20 = sadd.s32 1, %s1632_s16 }
   0xc   : > { %s50_s21 = sadd.s32 1, %s1624_s14  ;;  %p43_p0 = scmp.ge.s32.totalorder %s41_s20, 2 }
   0xd   : > { %p57_p1 = scmp.ne.s32.totalorder %s1624_s14, %s1620_s13  ;;  %p58_p2 = scmp.eq.s32.totalorder %s1636_s17, 0 }
   0xe   : > { %p63_p3 = scmp.ne.s32.totalorder %s1620_s13, %s1616_s12  ;;  %s2071_s20 = smov (%p43_p0, %s41_s20), 0 }
   0xf   : > { %2044 = sst [smem:[#allocation17_spill]] %s2071_s20  ;;  %p1712_p4 = por %p58_p2, %p57_p1 }
  0x10   : > { %p64_p5 = scmp.eq.s32.totalorder %s1700_s18, 0  ;;  %s45_s23 = ssub.s32 %s1632_s16, %s2071_s20 }
  0x11   : > { %p145_p6 = scmp.eq.s32.totalorder %s1700_s18, 1  ;;  %p48_p7 = scmp.eq.s32.totalorder %s45_s23, 0 }
  0x12   : > { %p1720_p8 = por %p64_p5, %p63_p3  ;;  %p151_p10 = scmp.eq.s32.totalorder %s1261_s19, 1 }
  0x13   : > { %p1724_p9 = por %p145_p6, %p57_p1  ;;  %p1377_p13 = scmp.lt.s32.totalorder %s1636_s17, 2 }
  0x14   : > { %s2046_s24 = scalar_select %p1720_p8, 1, 0 }
  0x15   : > { %s2047_s25 = scalar_select %p1724_p9, 1, 0 }
  0x16   : > { %s1729_s26 = scalar_select %p48_p7, %s1624_s14, %s50_s21  }
  0x17   : > { %p1731_p11 = por %p151_p10, %p63_p3  ;;  %s2035_s28 = sand.u32 1, %s1624_s14  }
  0x18   : > { %2048 = sst [smem:[#allocation18_spill]] %s1729_s26  ;;  %s1740_s29 = sshll.u32 %s2035_s28, 5 }
  0x19   : > { %s2049_s27 = scalar_select %p1731_p11, 1, 0 }
  0x1a   : > { %s1743_s30 = sshll.u32 %s1632_s16, 9  ;;  %p1747_p0 = pnand %p1377_p13, %p1712_p4 }
  0x1b   : > { %s193_s5 = sand.u32 1, %s1636_s17   ;;  %s2051_s1 = sld [smem:[#allocation19_spill]] }
  0x1c   : > { %s197_s9 = scalar_lea.vmem [#allocation9], %s1740_s29  ;;  %s1763_s11 = scalar_lea.sflag [#allocation10], %s193_s5 }
  0x1d   : > { %s205_s10 = sshll.u32 %s197_s9, 4  ;;  %p1769_p4 = pneg %p1747_p0  ;;  %s1760_s10 = int_to_ptr.vmem [resolvable:$true] %s205_s10 }
  0x21   : > { %s1756_s8 = scalar_lea.hbm %s2051_s1, %s1743_s30  ;;  %s1465_s6 = scalar_lea.hbm %s2051_s1, 1024 }
  0x22   : > { %s1460_s19 = scalar_lea.hbm %s1756_s8, 512  ;;  %p1466_p7 = scmp.lt.u32.totalorder %s1756_s8, %s2051_s1 }
  0x23   : > { %p1461_p3 = scmp.ne.s32.totalorder %s1756_s8, %s1460_s19  ;;  %p1467_p10 = scmp.lt.u32.totalorder %s1465_s6, %s1460_s19 }
  0x24   : > { %p1469_p12 = scmp.lt.u32.totalorder %s1460_s19, %s1756_s8 }
  0x25   : > { %p1463_p5 = pnand %p1769_p4, %p1461_p3  ;;  %p1468_p13 = por %p1467_p10, %p1466_p7 }
  0x27   : > { %p1464_p6 = pneg %p1463_p5  ;;  %p1470_p1 = por %p1469_p12, %p1468_p13 }
  0x29   : > { %p1471_p2 = pnand %p1470_p1, %p1464_p6 }
  0x2b   : > { %1474 = shalt.err (!%p1471_p2)
}
  0x2c   : > { %s1475_s5 = scalar_lea.vmem %s1760_s10, 512  ;;  %s1638_s22 = smov [#allocation9]  }
  0x2d   : > { %p1476_p3 = scmp.ne.s32.totalorder %s1760_s10, %s1475_s5  ;;  %s1480_s23 = sshll.u32 %s1638_s22, 4  ;;  %s1481_s23 = int_to_ptr.vmem [resolvable:$false] %s1480_s23 }
  0x2e   : > { %s1482_s7 = scalar_lea.vmem %s1481_s23, 1024  ;;  %p1483_p9 = scmp.lt.s32.totalorder %s1760_s10, %s1481_s23 }
  0x2f   : > { %p1478_p5 = pnand %p1476_p3, %p1769_p4  ;;  %p1484_p8 = scmp.lt.s32.totalorder %s1482_s7, %s1475_s5 }
  0x31   : > { %p1479_p11 = pneg %p1478_p5  ;;  %p1485_p7 = por %p1484_p8, %p1483_p9 }
  0x33   : > { %p1486_p10 = pnand %p1485_p7, %p1479_p11 }
  0x35   : > { %1489 = shalt.err (!%p1486_p10)
}
  0x36   : > { %s2036_s19 = smov 128   ;;  %s2038_s6 = smov 8  }
  0x37   : > { %1369 = dma.hbm_to_vmem [thread:$0]  (!%p1747_p0), %s1756_s8, 512, %s1760_s10, %s1763_s11, %s2036_s19, %s2036_s19, %s2038_s6  }
  0x38   : > { %p2053_p8 = scmp.lt.s32.totalorder %s1636_s17, 3  ;;  %p2054_p9 = scmp.ge.s32.totalorder %s1636_s17, 1 }
  0x39   : > { %s1808_s23 = scalar_lea.hbm %s2029_s0, %s1743_s30  ;;  %s175_s7 = scalar_lea.vmem [#allocation6], %s1740_s29 }
  0x3a   : > { %p1800_p11 = pnand %p2054_p9, %p2053_p8  ;;  %s183_s28 = sshll.u32 %s175_s7, 4  ;;  %s1811_s28 = int_to_ptr.vmem [resolvable:$true] %s183_s28 }
  0x3b   : > { %s1817_s19 = scalar_lea.hbm %s2031_s2, %s1743_s30  ;;  %s2056_s6 = sand.u32 1, %s1624_s14  }
  0x3c   : > { %s2055_s9 = scalar_select %p1800_p11, 1, 0 }
  0x3d   : > { %s1821_s1 = scalar_lea.sflag [#allocation7], %s2056_s6  ;;  %s1490_s20 = scalar_lea.hbm %s1808_s23, 512 }
  0x3e   : > { %p1491_p12 = scmp.ne.s32.totalorder %s1808_s23, %s1490_s20  ;;  %s1495_s16 = scalar_lea.hbm %s2029_s0, 1024 }
  0x3f   : > { %p1496_p6 = scmp.lt.u32.totalorder %s1808_s23, %s2029_s0  ;;  %p1497_p13 = scmp.lt.u32.totalorder %s1495_s16, %s1490_s20 }
  0x40   : > { %p1493_p1 = pnand %p1491_p12, %p1769_p4  ;;  %p1499_p5 = scmp.lt.u32.totalorder %s1490_s20, %s1808_s23 }
  0x41   : > { %p1498_p3 = por %p1497_p13, %p1496_p6 }
  0x42   : > { %p1494_p2 = pneg %p1493_p1 }
  0x43   : > { %p1500_p7 = por %p1499_p5, %p1498_p3 }
  0x45   : > { %p1501_p10 = pnand %p1500_p7, %p1494_p2 }
  0x47   : > { %1504 = shalt.err (!%p1501_p10)
}
  0x48   : > { %s1505_s30 = scalar_lea.vmem %s1811_s28, 512  ;;  %s1641_s6 = smov [#allocation6]  }
  0x49   : > { %p1506_p8 = scmp.ne.s32.totalorder %s1811_s28, %s1505_s30  ;;  %s1510_s8 = sshll.u32 %s1641_s6, 4  ;;  %s1511_s8 = int_to_ptr.vmem [resolvable:$false] %s1510_s8 }
  0x4a   : > { %s1512_s26 = scalar_lea.vmem %s1511_s8, 1024  ;;  %p1513_p1 = scmp.lt.s32.totalorder %s1811_s28, %s1511_s8 }
  0x4b   : > { %p1508_p9 = pnand %p1506_p8, %p1769_p4  ;;  %p1514_p11 = scmp.lt.s32.totalorder %s1512_s26, %s1505_s30 }
  0x4d   : > { %p1509_p12 = pneg %p1508_p9  ;;  %p1515_p6 = por %p1514_p11, %p1513_p1 }
  0x4f   : > { %p1516_p13 = pnand %p1515_p6, %p1509_p12 }
  0x51   : > { %1519 = shalt.err (!%p1516_p13)
}
  0x52   : > { %s2057_s16 = smov 8   ;;  %s2058_s20 = smov 128  }
  0x53   : > { %1366 = dma.hbm_to_vmem [thread:$0]  (!%p1747_p0), %s1808_s23, 512, %s1811_s28, %s1821_s1, %s2058_s20, %s2058_s20, %s2057_s16  }
  0x54   : > { %s219_s10 = scalar_lea.vmem [#allocation11], %s1740_s29  ;;  %s1520_s22 = scalar_lea.hbm %s1817_s19, 512 }
  0x55   : > { %s227_s5 = sshll.u32 %s219_s10, 4  ;;  %p1521_p11 = scmp.ne.s32.totalorder %s1817_s19, %s1520_s22  ;;  %s1849_s5 = int_to_ptr.vmem [resolvable:$true] %s227_s5 }
  0x56   : > { %s1525_s6 = scalar_lea.hbm %s2031_s2, 1024  ;;  %p1526_p5 = scmp.lt.u32.totalorder %s1817_s19, %s2031_s2 }
  0x57   : > { %p1523_p2 = pnand %p1521_p11, %p1769_p4  ;;  %p1527_p7 = scmp.lt.u32.totalorder %s1525_s6, %s1520_s22 }
  0x58   : > { %p1529_p8 = scmp.lt.u32.totalorder %s1520_s22, %s1817_s19 }
  0x59   : > { %p1524_p3 = pneg %p1523_p2  ;;  %p1528_p10 = por %p1527_p7, %p1526_p5 }
  0x5b   : > { %p1530_p9 = por %p1529_p8, %p1528_p10 }
  0x5d   : > { %p1531_p12 = pnand %p1530_p9, %p1524_p3 }
  0x5f   : > { %1534 = shalt.err (!%p1531_p12)
}
  0x60   : > { %s1535_s1 = scalar_lea.vmem %s1849_s5, 512  ;;  %s1642_s28 = smov [#allocation11]  }
  0x61   : > { %p1536_p1 = scmp.ne.s32.totalorder %s1849_s5, %s1535_s1  ;;  %s1540_s29 = sshll.u32 %s1642_s28, 4  ;;  %s1541_s29 = int_to_ptr.vmem [resolvable:$false] %s1540_s29 }
  0x62   : > { %s1542_s23 = scalar_lea.vmem %s1541_s29, 1024  ;;  %p1543_p11 = scmp.lt.s32.totalorder %s1849_s5, %s1541_s29 }
  0x63   : > { %p1538_p6 = pnand %p1536_p1, %p1769_p4  ;;  %p1544_p2 = scmp.lt.s32.totalorder %s1542_s23, %s1535_s1 }
  0x65   : > { %p1539_p13 = pneg %p1538_p6  ;;  %p1545_p5 = por %p1544_p2, %p1543_p11 }
  0x67   : > { %p1546_p7 = pnand %p1545_p5, %p1539_p13 }
  0x69   : > { %1549 = shalt.err (!%p1546_p7)
}
  0x6a   : > { %1372 = dma.hbm_to_vmem [thread:$0]  (!%p1747_p0), %s1817_s19, 512, %s1849_s5, %s1763_s11, %s2058_s20, %s2058_s20, %s2057_s16  }
  0x6b   : > { %p2059_p4 = scmp.ne.s32.totalorder %s2055_s9, 0 }
  0x6c   : > { %s1879_s21 = sand.u32 (!%p2059_p4), 1, %s1620_s13   ;;  %p2060_p3 = scmp.ne.s32.totalorder (!%p2059_p4), %s2046_s24, 0 }
  0x6d   : > { %239 = sbr.rel (%p2059_p4) target bundleno = 941 (0x3ad), region = 32  ;;  %s1882_s10 = sshll.u32 (!%p2059_p4), %s1879_s21, 5 }
  0x6e   : > { %s242_s4 = scalar_lea.sflag (!%p2059_p4), [#allocation7], %s1879_s21  ;;  %s1886_s22 = scalar_lea.vmem (!%p2059_p4), [#allocation6], %s1882_s10 }
  0x74   : > { %1603 = dma.done.wait (%p2060_p3), %s242_s4, 512  }
  0x75   : > { %1605 = vsyncadd (%p2060_p3), %s242_s4, 4294966784  ;;  %s250_s11 = sand.u32 1, %s1700_s18   ;;  %s1894_s9 = scalar_lea.vmem [#allocation9], %s1882_s10 }
  0x76   : > { %s251_s19 = scalar_lea.sflag [#allocation10], %s250_s11 }
  0x77   : > { %1607 = dma.done.wait (%p2060_p3), %s251_s19, 1024  }
  0x78   : > { %1609 = vsyncadd (%p2060_p3), %s251_s19, 4294966272  ;;  %vm312_vm0 = vcmask 261120   ;;  %v1643_v0 = vmov 0.0   ;;  %vm1644_vm1 = vmmov 0   ;;  %v333_v1 = vld [vmem:[%s1894_s9] sm:$0xff]  ;;  %v334_v3 = vld [vmem:[%s1894_s9 + $0x8] sm:$0xff] }
  0x79   : > { %1315 = vmatprep.subr.mxu0 %v1643_v0  ;;  %325 = vst.msk [vmem:[#allocation5] sm:$0xff] %vm312_vm0, %v1643_v0  ;;  %326 = vst.msk [vmem:[#allocation5 + $0x8] sm:$0xff] %vm312_vm0, %v1643_v0  ;;  %1317 = vmatprep.mubr.msk.f32.mxu0 %vm1644_vm1, %v1643_v0  ;;  %v304_v2 = vld [vmem:[%s1886_s22] sm:$0xff]  ;;  %v305_v5 = vld [vmem:[%s1886_s22 + $0x8] sm:$0xff]  ;;  %v1645_v17 = vmov 0   ;;  %vm650_vm2 = vcmask 64512  }
  0x7a   : > { %327 = vst.msk [vmem:[#allocation5 + $0x10] sm:$0xff] %vm312_vm0, %v1643_v0  ;;  %328 = vst.msk [vmem:[#allocation5 + $0x18] sm:$0xff] %vm312_vm0, %v1643_v0  ;;  %1320 = vmatprep.subr.mxu1 %v1643_v0  ;;  %1322 = vmatprep.mubr.msk.f32.mxu1 %vm1644_vm1, %v1643_v0  ;;  %v308_v4 = vmul.f32 0.25503486, %v304_v2  ;;  %v306_v6 = vld [vmem:[%s1886_s22 + $0x10] sm:$0xff]  ;;  %v307_v9 = vld [vmem:[%s1886_s22 + $0x18] sm:$0xff] }
  0x7b   : > { %1316 = vmatpush3.xpose.msk.msra.mxu0 %vm312_vm0, %v333_v1  ;;  %1321 = vmatpush3.xpose.msk.msra.mxu1 %vm312_vm0, %v334_v3  ;;  %v309_v7 = vmul.f32 0.25503486, %v305_v5  ;;  %v310_v8 = vmul.f32 0.25503486, %v306_v6  ;;  %v311_v10 = vmul.f32 0.25503486, %v307_v9 }
  0x7c   : > { %1325 = vmatprep.subr.mxu0 %v1643_v0  ;;  %1330 = vmatprep.subr.mxu1 %v1643_v0  ;;  %313 = vst.msk [vmem:[#allocation2] sm:$0xff] %vm312_vm0, %v308_v4  ;;  %v335_v11 = vld [vmem:[%s1894_s9 + $0x10] sm:$0xff]  ;;  %v336_v13 = vld [vmem:[%s1894_s9 + $0x18] sm:$0xff]  ;;  %s263_s18 = scalar_lea.vmem [#allocation11], %s1882_s10  ;;  %s295_s24 = scalar_lea.vmem [#allocation12], %s1882_s10 }
  0x7d   : > { %314 = vst.msk [vmem:[#allocation2 + $0x8] sm:$0xff] %vm312_vm0, %v309_v7  ;;  %315 = vst.msk [vmem:[#allocation2 + $0x10] sm:$0xff] %vm312_vm0, %v310_v8  ;;  %1434 = vset.pattern.permute.xlu0 %v1645_v17  ;;  %1435 = vset.pattern.permute.xlu1 %v1645_v17  ;;  %v337_v34 = vld [vmem:[%s263_s18] sm:$0xff]  ;;  %v338_v35 = vld [vmem:[%s263_s18 + $0x8] sm:$0xff]  ;;  %s1125_s16 = sshll.u32 %s295_s24, 4  ;;  %s1298_s20 = sshll.u32 %s1628_s15, 9  ;;  %s1973_s16 = int_to_ptr.vmem [resolvable:$true] %s1125_s16 }
  0x7e   : > { %316 = vst.msk [vmem:[#allocation2 + $0x18] sm:$0xff] %vm312_vm0, %v311_v10  ;;  %v339_v43 = vld [vmem:[%s263_s18 + $0x10] sm:$0xff]  ;;  %v340_v47 = vld [vmem:[%s263_s18 + $0x18] sm:$0xff]  ;;  %s1979_s30 = scalar_lea.hbm %s2032_s3, %s1298_s20  ;;  %s1111_s6 = scalar_lea.sflag [#allocation8], %s1879_s21 }
  0x7f   : > { %s1550_s8 = scalar_lea.vmem %s1973_s16, 512  ;;  %p2061_p10 = scmp.ne.s32.totalorder %s2047_s25, 0 }
  0x80   : > { %v732_v17 = vld [vmem:[#allocation5 + $0x8] sm:$0xff]  ;;  %p1551_p0 = scmp.ne.s32.totalorder %s1973_s16, %s1550_s8  ;;  %s1646_s15 = smov [#allocation12]  }
  0x81   : > { %s1554_s26 = sshll.u32 %s1646_s15, 4  ;;  %s1555_s26 = int_to_ptr.vmem [resolvable:$false] %s1554_s26 }
  0x82   : > { %p1552_p8 = pnand %p1551_p0, %p2061_p10  ;;  %s1556_s1 = scalar_lea.vmem %s1555_s26, 1024 }
  0x83   : > { %v329_v12 = vld [vmem:[#allocation2] sm:$0xff]  ;;  %p1557_p12 = scmp.lt.s32.totalorder %s1973_s16, %s1555_s26  ;;  %p1558_p1 = scmp.lt.s32.totalorder %s1556_s1, %s1550_s8 }
  0x84   : > { %1318 = vmatmul.mubr.msk.f32.vlgmr.msra.gmra.mrb[0].mxu0 %vm312_vm0, %v329_v12  ;;  %v330_v14 = vld [vmem:[#allocation2 + $0x8] sm:$0xff]  ;;  %v331_v15 = vld [vmem:[#allocation2 + $0x10] sm:$0xff]  ;;  %p1553_p9 = pneg %p1552_p8 }
  0x85   : > { %1323 = vmatmul.mubr.msk.f32.vlgmr.msra.gmra.mrb[0].mxu1 %vm312_vm0, %v330_v14  ;;  %1326 = vmatpush3.xpose.msk.msra.mxu0 %vm312_vm0, %v335_v11  ;;  %v332_v16 = vld [vmem:[#allocation2 + $0x18] sm:$0xff]  ;;  %v731_v14 = vld [vmem:[#allocation5] sm:$0xff]  ;;  %p1559_p6 = por %p1558_p1, %p1557_p12 }
  0x86   : > { %1327 = vmatprep.mubr.msk.f32.mxu0 %vm1644_vm1, %v1643_v0  ;;  %1331 = vmatpush3.xpose.msk.msra.mxu1 %vm312_vm0, %v336_v13 }
  0x87   : > { %1332 = vmatprep.mubr.msk.f32.mxu1 %vm1644_vm1, %v1643_v0  ;;  %1335 = vmatprep.subr.mxu0 %v1643_v0  ;;  %p1560_p13 = pnand %p1559_p6, %p1553_p9 }
  0x88   : > { %1328 = vmatmul.mubr.msk.f32.vlgmr.msra.gmra.mrb[2].mxu0 %vm312_vm0, %v331_v15  ;;  %1340 = vmatprep.subr.mxu1 %v1643_v0 }
  0x89   : > { %1333 = vmatmul.mubr.msk.f32.vlgmr.msra.gmra.mrb[2].mxu1 %vm312_vm0, %v332_v16  ;;  %1337 = vmatprep.mubr.msk.f32.mxu0 %vm1644_vm1, %v1643_v0 }
  0x8a   : > { %1342 = vmatprep.mubr.msk.f32.mxu1 %vm1644_vm1, %v1643_v0  ;;  %1336 = vmatpush3.msra.mxu0 %v337_v34 }
  0x8b   : > { %1345 = vmatprep.subr.mxu0 %v1643_v0  ;;  %1341 = vmatpush3.msra.mxu1 %v338_v35 }
  0x8c   : > { %1350 = vmatprep.subr.mxu1 %v1643_v0 }
 0x157   : > { %v414_v18 = vpop.f32.mrb[0].mxu0 }
 0x158   : > { %v1319_v19 = vpop.f32.mrb[1].mxu0  ;;  %v651_v20 = vsel %vm650_vm2, %v414_v18, -inf  ;;  %v490_v21 = vpop.f32.mrb[0].mxu1 }
 0x159   : > { %652 = vmax.xlane.f32.xlu0 %v651_v20  ;;  %v1324_v22 = vpop.f32.mrb[1].mxu1  ;;  %v654_v23 = vsel %vm650_vm2, %v490_v21, -inf }
 0x15b   : > { %v566_v24 = vpop.f32.mrb[2].mxu0 }
 0x15c   : > { %v1329_v25 = vpop.f32.mrb[3].mxu0  ;;  %v657_v26 = vsel %vm650_vm2, %v566_v24, -inf  ;;  %v642_v27 = vpop.f32.mrb[2].mxu1 }
 0x15d   : > { %655 = vmax.xlane.f32.xlu0 %v654_v23  ;;  %658 = vmax.xlane.f32.xlu1 %v657_v26  ;;  %v1334_v28 = vpop.f32.mrb[3].mxu1  ;;  %v660_v29 = vsel %vm650_vm2, %v642_v27, -inf }
 0x161   : > { %661 = vmax.xlane.f32.xlu1 %v660_v29  ;;  %v734_v29 = vld [vmem:[#allocation5 + $0x18] sm:$0xff] }
 0x1e6   : > { %v653_v30 = vpop.xlane.xlu0 %652 }
 0x1e7   : > { %677 = vperm.xlu0 %1434, %v653_v30   ;;  %v667_v55 = vsub.f32 -inf, %v653_v30 }
 0x1ea   : > { %v656_v31 = vpop.xlane.xlu0 %655  ;;  %v659_v32 = vpop.xlane.xlu1 %658 }
 0x1eb   : > { %682 = vperm.xlu1 %1435, %v656_v31   ;;  %v668_v53 = vsub.f32 -inf, %v656_v31  ;;  %v669_v56 = vsub.f32 -inf, %v659_v32 }
 0x1ee   : > { %v662_v33 = vpop.xlane.xlu1 %661 }
 0x1ef   : > { %687 = vperm.xlu1 %1435, %v659_v32   ;;  %v670_v57 = vsub.f32 -inf, %v662_v33 }
 0x1f3   : > { %692 = vperm.xlu1 %1435, %v662_v33  }
 0x266   : > { %v678_v36 = vpop.permute.xlu0 %677 }
 0x267   : > { %v695_v37 = vsub.f32 %v414_v18, %v678_v36 }
 0x269   : > { %1436 = vpow2.f32 %v695_v37 }
 0x26a   : > { %v683_v38 = vpop.permute.xlu1 %682 }
 0x26b   : > { %v696_v39 = vsub.f32 %v490_v21, %v683_v38 }
 0x26d   : > { %1438 = vpow2.f32 %v696_v39 }
 0x26e   : > { %v688_v40 = vpop.permute.xlu1 %687 }
 0x26f   : > { %v697_v41 = vsub.f32 %v566_v24, %v688_v40  ;;  %v733_v24 = vld [vmem:[#allocation5 + $0x10] sm:$0xff] }
 0x271   : > { %1440 = vpow2.f32 %v697_v41 }
 0x272   : > { %v693_v42 = vpop.permute.xlu1 %692 }
 0x273   : > { %v1437_v44 = vpop.eup %1436  ;;  %v698_v45 = vsub.f32 %v642_v27, %v693_v42 }
 0x274   : > { %1338 = vmatmul.mubr.msk.f32.vlgmr.msra.gmra.mrb[4].mxu0 %vm650_vm2, %v1437_v44  ;;  %v711_v46 = vsel %vm650_vm2, %v1437_v44, 0.0 }
 0x275   : > { %1442 = vpow2.f32 %v698_v45  ;;  %712 = vadd.xlane.f32.xlu1 %v711_v46  ;;  %1346 = vmatpush3.msra.mxu0 %v339_v43 }
 0x276   : > { %1347 = vmatprep.mubr.msk.f32.mxu0 %vm1644_vm1, %v1643_v0  ;;  %1444 = vpow2.f32 %v668_v53 }
 0x277   : > { %v1439_v48 = vpop.eup %1438  ;;  %1446 = vpow2.f32 %v667_v55 }
 0x278   : > { %1343 = vmatmul.mubr.msk.f32.vlgmr.msra.gmra.mrb[4].mxu1 %vm650_vm2, %v1439_v48  ;;  %v714_v49 = vsel %vm650_vm2, %v1439_v48, 0.0  ;;  %1448 = vpow2.f32 %v669_v56 }
 0x279   : > { %715 = vadd.xlane.f32.xlu0 %v714_v49  ;;  %1351 = vmatpush3.msra.mxu1 %v340_v47  ;;  %1450 = vpow2.f32 %v670_v57 }
 0x27a   : > { %1352 = vmatprep.mubr.msk.f32.mxu1 %vm1644_vm1, %v1643_v0 }
 0x27b   : > { %v1441_v50 = vpop.eup %1440 }
 0x27c   : > { %1348 = vmatmul.mubr.msk.f32.vlgmr.msra.gmra.mrb[6].mxu0 %vm650_vm2, %v1441_v50  ;;  %v717_v51 = vsel %vm650_vm2, %v1441_v50, 0.0 }
 0x27d   : > { %718 = vadd.xlane.f32.xlu1 %v717_v51 }
 0x27f   : > { %v1443_v52 = vpop.eup %1442 }
 0x280   : > { %1353 = vmatmul.mubr.msk.f32.vlgmr.msra.gmra.mrb[6].mxu1 %vm650_vm2, %v1443_v52  ;;  %v720_v54 = vsel %vm650_vm2, %v1443_v52, 0.0  ;;  %v1445_v58 = vpop.eup %1444 }
 0x281   : > { %721 = vadd.xlane.f32.xlu1 %v720_v54  ;;  %v1447_v59 = vpop.eup %1446  ;;  %v708_v1 = vmul.f32 0.0, %v1445_v58 }
 0x282   : > { %v1449_v60 = vpop.eup %1448  ;;  %v707_v62 = vmul.f32 0.0, %v1447_v59 }
 0x283   : > { %v1451_v61 = vpop.eup %1450  ;;  %v709_v4 = vmul.f32 0.0, %v1449_v60 }
 0x284   : > { %v710_v7 = vmul.f32 0.0, %v1451_v61 }
 0x28f   : > { %742 = vperm.xlu0 %1434, %v1445_v58  }
 0x292   : > { %737 = vperm.xlu1 %1435, %v1447_v59  }
 0x296   : > { %747 = vperm.xlu1 %1435, %v1449_v60  }
 0x29a   : > { %752 = vperm.xlu1 %1435, %v1451_v61  }
 0x302   : > { %v713_v63 = vpop.xlane.xlu1 %712 }
 0x303   : > { %v723_v0 = vadd.f32 %v713_v63, %v707_v62 }
 0x305   : > { %1452 = vrcp.f32 %v723_v0 }
 0x306   : > { %v716_v2 = vpop.xlane.xlu0 %715 }
 0x307   : > { %v724_v3 = vadd.f32 %v716_v2, %v708_v1 }
 0x309   : > { %1454 = vrcp.f32 %v724_v3 }
 0x30a   : > { %v719_v5 = vpop.xlane.xlu1 %718 }
 0x30b   : > { %v725_v6 = vadd.f32 %v719_v5, %v709_v4 }
 0x30d   : > { %1456 = vrcp.f32 %v725_v6 }
 0x30e   : > { %v722_v8 = vpop.xlane.xlu1 %721  ;;  %v743_v18 = vpop.permute.xlu0 %742 }
 0x30f   : > { %v1453_v9 = vpop.eup %1452  ;;  %v726_v10 = vadd.f32 %v722_v8, %v710_v7  ;;  %v756_v23 = vmul.f32 %v743_v18, %v732_v17 }
 0x310   : > { %1084 = vperm.xlu1 %1435, %v1453_v9  }
 0x311   : > { %1458 = vrcp.f32 %v726_v10 }
 0x312   : > { %v738_v15 = vpop.permute.xlu1 %737 }
 0x313   : > { %v1455_v11 = vpop.eup %1454  ;;  %v755_v16 = vmul.f32 %v738_v15, %v731_v14 }
 0x314   : > { %1089 = vperm.xlu0 %1434, %v1455_v11  }
 0x316   : > { %v748_v22 = vpop.permute.xlu1 %747 }
 0x317   : > { %v1457_v12 = vpop.eup %1456  ;;  %v757_v28 = vmul.f32 %v748_v22, %v733_v24 }
 0x318   : > { %1094 = vperm.xlu1 %1435, %v1457_v12  }
 0x31a   : > { %v753_v30 = vpop.permute.xlu1 %752 }
 0x31b   : > { %v1459_v13 = vpop.eup %1458  ;;  %v758_v34 = vmul.f32 %v753_v30, %v734_v29 }
 0x31c   : > { %1099 = vperm.xlu0 %1434, %v1459_v13  }
 0x347   : > { %v828_v19 = vpop.f32.mrb[4].mxu0 }
 0x348   : > { %v1051_v20 = vadd.f32 %v828_v19, %v755_v16  ;;  %v1339_v21 = vpop.f32.mrb[5].mxu0 }
 0x34a   : > { %1055 = vst.msk [vmem:[#allocation5] sm:$0xff] %vm312_vm0, %v1051_v20 }
 0x34b   : > { %v901_v25 = vpop.f32.mrb[4].mxu1 }
 0x34c   : > { %v1052_v26 = vadd.f32 %v901_v25, %v756_v23  ;;  %v1344_v27 = vpop.f32.mrb[5].mxu1 }
 0x34e   : > { %1056 = vst.msk [vmem:[#allocation5 + $0x8] sm:$0xff] %vm312_vm0, %v1052_v26 }
 0x34f   : > { %v974_v31 = vpop.f32.mrb[6].mxu0 }
 0x350   : > { %v1053_v32 = vadd.f32 %v974_v31, %v757_v28  ;;  %v1349_v33 = vpop.f32.mrb[7].mxu0 }
 0x351   : > { %v1078_v39 = vld [vmem:[#allocation5] sm:$0xff] }
 0x352   : > { %1057 = vst.msk [vmem:[#allocation5 + $0x10] sm:$0xff] %vm312_vm0, %v1053_v32 }
 0x353   : > { %v1047_v35 = vpop.f32.mrb[6].mxu1 }
 0x354   : > { %v1054_v36 = vadd.f32 %v1047_v35, %v758_v34  ;;  %v1354_v37 = vpop.f32.mrb[7].mxu1 }
 0x355   : > { %v1079_v41 = vld [vmem:[#allocation5 + $0x8] sm:$0xff] }
 0x356   : > { %1058 = vst.msk [vmem:[#allocation5 + $0x18] sm:$0xff] %vm312_vm0, %v1054_v36 }
 0x359   : > { %v1080_v45 = vld [vmem:[#allocation5 + $0x10] sm:$0xff] }
 0x35d   : > { %v1081_v48 = vld [vmem:[#allocation5 + $0x18] sm:$0xff] }
 0x38f   : > { %v1085_v38 = vpop.permute.xlu1 %1084 }
 0x390   : > { %v1102_v40 = vmul.f32 %v1085_v38, %v1078_v39 }
 0x392   : > { %1106 = vst.msk [vmem:[%s295_s24] sm:$0xff] %vm312_vm0, %v1102_v40 }
 0x393   : > { %v1090_v42 = vpop.permute.xlu0 %1089 }
 0x394   : > { %v1103_v43 = vmul.f32 %v1090_v42, %v1079_v41 }
 0x396   : > { %1107 = vst.msk [vmem:[%s295_s24 + $0x8] sm:$0xff] %vm312_vm0, %v1103_v43 }
 0x397   : > { %v1095_v44 = vpop.permute.xlu1 %1094 }
 0x398   : > { %v1104_v46 = vmul.f32 %v1095_v44, %v1080_v45 }
 0x39a   : > { %1108 = vst.msk [vmem:[%s295_s24 + $0x10] sm:$0xff] %vm312_vm0, %v1104_v46 }
 0x39b   : > { %v1100_v47 = vpop.permute.xlu0 %1099 }
 0x39c   : > { %v1105_v49 = vmul.f32 %v1100_v47, %v1081_v48 }
 0x39e   : > { %1109 = vst.msk [vmem:[%s295_s24 + $0x18] sm:$0xff] %vm312_vm0, %v1105_v49 }
 0x39f   : > { %1563 = shalt.err (!%p1560_p13)
}
 0x3a0   : > { %s1564_s28 = scalar_lea.hbm %s1979_s30, 512  ;;  %s1568_s10 = scalar_lea.hbm %s2032_s3, 1024 }
 0x3a1   : > { %p1565_p11 = scmp.ne.s32.totalorder %s1979_s30, %s1564_s28  ;;  %p1569_p7 = scmp.lt.u32.totalorder %s1979_s30, %s2032_s3 }
 0x3a2   : > { %p1570_p4 = scmp.lt.u32.totalorder %s1568_s10, %s1564_s28  ;;  %p1572_p0 = scmp.lt.u32.totalorder %s1564_s28, %s1979_s30 }
 0x3a3   : > { %p1566_p2 = pnand %p1565_p11, %p2061_p10 }
 0x3a4   : > { %p1571_p3 = por %p1570_p4, %p1569_p7 }
 0x3a5   : > { %p1567_p5 = pneg %p1566_p2 }
 0x3a6   : > { %p1573_p8 = por %p1572_p0, %p1571_p3 }
 0x3a8   : > { %p1574_p9 = pnand %p1573_p8, %p1567_p5 }
 0x3aa   : > { %1577 = shalt.err (!%p1574_p9)
}
 0x3ab   : > { %s1647_s11 = smov 128   ;;  %s1648_s19 = smov 8  }
 0x3ac   : > { %1361 = dma.vmem_to_hbm [thread:$0]  (%p2061_p10), %s1973_s16, 512, %s1979_s30, %s1111_s6, %s1647_s11, %s1647_s11, %s1648_s19  }
 0x3ad PF: > { %s1140_s9 = sand.u32 1, %s1616_s12   ;;  %p2062_p12 = scmp.ne.s32.totalorder %s2049_s27, 0 }
 0x3ae   : > { %p2063_p1 = scmp.ge.s32.totalorder %s1636_s17, 2  ;;  %s1141_s18 = scalar_lea.sflag [#allocation8], %s1140_s9 }
 0x3b0   : > { %p1374_p6 = pnand %p2063_p1, %p2062_p12 }
 0x3b2   : > { %1611 = dma.done.wait (!%p1374_p6), %s1141_s18, 512  }
 0x3b3   : > { %1613 = vsyncadd (!%p1374_p6), %s1141_s18, 4294966784  ;;  %s22_s17 = sadd.s32 1, %s1636_s17   ;;  %s2064_s24 = sld [smem:[#allocation18_spill]] }
 0x3b4   : > { %p19_p13 = scmp.ge.s32.totalorder %s22_s17, 4   ;;  %s2065_s15 = sld [smem:[#allocation16_spill]] }
 0x3b5   : > { %s2066_s16 = sld [smem:[#allocation17_spill]]  ;;  %s2067_s12 = smov %s1620_s13 }
 0x3b6   : > { %s2068_s13 = smov %s1624_s14  ;;  %21 = sbr.rel (!%p19_p13) target bundleno = 10 (0xa), region = 109 }
 0x3b9   : > { %s2069_s14 = smov %s2064_s24 }
 0x3bd   :  { %1146 = vsyncpa [#allocation7], 1 }
 0x3be   :  { %1148 = vsyncpa [#allocation7 + $0x1], 1 }
 0x3bf   :  { %1149 = vsyncpa [#allocation10], 1 }
 0x3c0   :  { %1151 = vsyncpa [#allocation10 + $0x1], 1 }
 0x3c1   :  { %1152 = vsyncpa [#allocation8], 1 }
 0x3c2   :  { %1154 = vsyncpa [#allocation8 + $0x1], 1 }

</bundles_post_ra>
